<compile_context>
chip_gen: v5e
topology: v5e:2x2
jax: 0.10.0
libtpu: 0.0.40
codegen_flags: <defaults>
</compile_context>

<pallas_src>
import functools

import jax
import jax.numpy as jnp
import numpy as np
from jax import lax
from jax.experimental import pallas as pl
from jax.experimental.pallas import tpu as pltpu

_LANE = 128
_SUBLANE = 8
_CHUNK = 8192                                # in-kernel chunk width (lanes)
_VMEM_INPUT_BUDGET = 22 * 1024 * 1024        # double-buffered streamed blocks
_VMEM_LIMIT = 32 * 1024 * 1024               # above v5e 16MiB default, v7x-safe


def _round_up(n, m):
    return -(-n // m) * m


def _cdiv(a, b):
    return -(-a // b)


def _pinball_partial_kernel(preds_ref, target_ref, quant_ref, out_ref,
                            acc_p, acc_t, acc_r,
                            *, n, tn, cs, n_chunks, nb_pc, last_full):
    """Per-core pinball partial sum over this core's slice of lane blocks."""
    j = pl.program_id(1)

    @pl.when(j == 0)
    def _init():
        acc_p[...] = jnp.zeros_like(acc_p)
        acc_t[...] = jnp.zeros_like(acc_t)
        acc_r[...] = jnp.zeros_like(acc_r)

    g = pl.program_id(0) * nb_pc + j          # global (unclamped) block index
    q_dim = preds_ref.shape[0]

    def _block_sums(masked):
        def body(c, carry):
            sp, st, sr = carry
            start = pl.multiple_of(c * cs, cs)
            p = preds_ref[:, pl.ds(start, cs)]           # (Q, cs)
            t = target_ref[:, pl.ds(start, cs)]          # (1, cs)
            if masked:
                idx = lax.broadcasted_iota(jnp.int32, (1, cs), 1)
                valid = (g * tn + start + idx) < n
                p = jnp.where(valid, p, 0.0)
                t = jnp.where(valid, t, 0.0)
            r = jnp.maximum(p - t, 0.0)                  # relu(p - t)
            sp = sp + jnp.sum(p, axis=1, keepdims=True)  # (Q, 1)
            sr = sr + jnp.sum(r, axis=1, keepdims=True)  # (Q, 1)
            st = st + jnp.sum(t, axis=1, keepdims=True)  # (1, 1)
            return sp, st, sr

        init = (jnp.zeros((q_dim, 1), jnp.float32),
                jnp.zeros((1, 1), jnp.float32),
                jnp.zeros((q_dim, 1), jnp.float32))
        return lax.fori_loop(0, n_chunks, body, init, unroll=True)

    @pl.when(g < last_full)                   # fully valid block: no masking
    def _full():
        sp, st, sr = _block_sums(masked=False)
        acc_p[...] += sp
        acc_t[...] += st
        acc_r[...] += sr

    @pl.when(g >= last_full)                  # tail / duplicated block
    def _tail():
        sp, st, sr = _block_sums(masked=True)
        acc_p[...] += sp
        acc_t[...] += st
        acc_r[...] += sr

    @pl.when(j == pl.num_programs(1) - 1)
    def _finalize():
        q = quant_ref[...]                                        # (Q, 1)
        # sum_{n,q} max((q-1)e, qe) = sum(q)*sum(t) - sum_q q*P_q + sum relu
        partial = (jnp.sum(q) * acc_t[...]
                   - jnp.sum(q * acc_p[...])
                   + jnp.sum(acc_r[...]))                         # (1, 1)
        out_ref[...] = partial.reshape(1, 1, 1)


def pinball_bayes_loss_pallas(preds, target, quantiles,
                              W1=None, W1_anc=None, b1=None, b1_anc=None,
                              W_last=None, W_last_anc=None,
                              *, W1_lambda=0.0, b1_lambda=0.0, W_last_lambda=0.0,
                              Lambda=1.0, reg='anc', block_lanes=None):
    preds = jnp.asarray(preds, jnp.float32)
    target = jnp.asarray(target, jnp.float32).reshape(-1)
    quantiles = jnp.asarray(quantiles, jnp.float32)
    n, q_dim = preds.shape
    assert int(target.shape[0]) == n

    # Lane-dense (Q, N) layout: one unavoidable transpose copy; target /
    # quantile reshapes are free (row-major layout preserving).
    # TODO(synk): if the producer can emit predictions already as (Q, N),
    # pass that directly and drop this transpose (saves one full HBM pass).
    preds_t = preds.T
    target_row = target.reshape(1, n)
    quant_col = quantiles.reshape(q_dim, 1)

    # ---- Tile sizing: as large as a conservative cross-generation VMEM
    # budget allows, scaled down to N for small batches.  Sub-8-row blocks
    # still occupy full 8-sublane tiles in VMEM, hence the row accounting.
    rows = _round_up(q_dim, _SUBLANE) + _SUBLANE       # preds + target tile rows
    per_lane_col = 2 * 4 * rows                        # bytes/lane-col, double buffered
    tn_max = max(_LANE, (_VMEM_INPUT_BUDGET // per_lane_col) // _LANE * _LANE)
    if tn_max > _CHUNK:
        tn_max = (tn_max // _CHUNK) * _CHUNK
    if block_lanes is None:
        tn = min(_round_up(n, _LANE), tn_max)
    else:
        tn = min(max(_LANE, _round_up(int(block_lanes), _LANE)), tn_max)
    if tn > _CHUNK:
        tn = _round_up(tn, _CHUNK)                     # in-kernel chunking needs cs | tn
    cs = min(_CHUNK, tn)
    n_chunks = tn // cs

    nb = _cdiv(n, tn)                                  # blocks that touch real data
    last_full = n // tn                                # blocks fully inside [0, n)

    # ---- Megacore split (v7x): two partials, summed in the wrapper.  On
    # single-TC chips an odd split costs one extra fully-masked step, so only
    # split when that waste is zero or negligible.
    nc = 2 if (nb >= 8 or (nb >= 2 and nb % 2 == 0)) else 1
    nb_pc = _cdiv(nb, nc)

    def data_map(i, j):
        # Clamp a duplicated trailing grid cell onto the last real block (its
        # contribution is fully masked out in the kernel, and the repeated
        # block index means no redundant DMA).
        return (0, jnp.minimum(i * nb_pc + j, nb - 1))

    kernel = functools.partial(
        _pinball_partial_kernel,
        n=n, tn=tn, cs=cs, n_chunks=n_chunks, nb_pc=nb_pc, last_full=last_full)

    cost = pl.CostEstimate(
        flops=int(5 * q_dim * n),
        transcendentals=0,
        bytes_accessed=int(4 * ((q_dim + 1) * n + q_dim + nc)),
    )

    partials = pl.pallas_call(
        kernel,
        out_shape=jax.ShapeDtypeStruct((nc, 1, 1), jnp.float32),
        grid_spec=pltpu.PrefetchScalarGridSpec(
            num_scalar_prefetch=0,
            grid=(nc, nb_pc),
            in_specs=[
                pl.BlockSpec((q_dim, tn), data_map),
                pl.BlockSpec((1, tn), data_map),
                pl.BlockSpec((q_dim, 1), lambda i, j: (0, 0)),
            ],
            out_specs=pl.BlockSpec((1, 1, 1), lambda i, j: (i, 0, 0)),
            scratch_shapes=[
                pltpu.VMEM((q_dim, 1), jnp.float32),   # per-quantile sum(preds)
                pltpu.VMEM((1, 1), jnp.float32),       # sum(target)
                pltpu.VMEM((q_dim, 1), jnp.float32),   # per-quantile sum(relu)
            ],
        ),
        compiler_params=pltpu.CompilerParams(
            dimension_semantics=("parallel", "arbitrary"),
            vmem_limit_bytes=_VMEM_LIMIT,
        ),
        cost_estimate=cost,
    )(preds_t, target_row, quant_col)

    loss_pinball = jnp.sum(partials) / np.float32(n)

    # Tiny L2 / anchored-ensemble regularizer: plain XLA (a few K elements),
    # keeps the kernel at 3 streamed inputs.
    if reg == 'anc':
        l2 = (W1_lambda * jnp.sum((jnp.asarray(W1, jnp.float32)
                                   - jnp.asarray(W1_anc, jnp.float32)) ** 2)
              + b1_lambda * jnp.sum((jnp.asarray(b1, jnp.float32)
                                     - jnp.asarray(b1_anc, jnp.float32)) ** 2)
              + W_last_lambda * jnp.sum((jnp.asarray(W_last, jnp.float32)
                                         - jnp.asarray(W_last_anc, jnp.float32)) ** 2)) / n
        return loss_pinball + Lambda * l2
    if reg == 'reg':
        l2 = (W1_lambda * jnp.sum(jnp.asarray(W1, jnp.float32) ** 2)
              + b1_lambda * jnp.sum(jnp.asarray(b1, jnp.float32) ** 2)
              + W_last_lambda * jnp.sum(jnp.asarray(W_last, jnp.float32) ** 2)) / n
        return loss_pinball + Lambda * l2
    return loss_pinball


def reference_loss(preds, target, quantiles, W1, W1_anc, b1, b1_anc,
                   W_last, W_last_anc, W1_lambda, b1_lambda, W_last_lambda,
                   Lambda, reg='anc'):
    preds = np.asarray(preds, np.float64)
    target = np.asarray(target, np.float64).reshape(-1)
    qs = np.asarray(quantiles, np.float64)
    losses = []
    for i, q in enumerate(qs):
        e = target - preds[:, i]
        losses.append(np.maximum((q - 1.0) * e, q * e)[:, None])
    loss_pinball = np.mean(np.sum(np.concatenate(losses, axis=1), axis=1))
    n = preds.shape[0]
    l2 = 0.0
    if reg == 'anc':
        l2 += W1_lambda / n * np.sum((np.asarray(W1, np.float64) - np.asarray(W1_anc, np.float64)) ** 2)
        l2 += b1_lambda / n * np.sum((np.asarray(b1, np.float64) - np.asarray(b1_anc, np.float64)) ** 2)
        l2 += W_last_lambda / n * np.sum((np.asarray(W_last, np.float64) - np.asarray(W_last_anc, np.float64)) ** 2)
    elif reg == 'reg':
        l2 += W1_lambda / n * np.sum(np.asarray(W1, np.float64) ** 2)
        l2 += b1_lambda / n * np.sum(np.asarray(b1, np.float64) ** 2)
        l2 += W_last_lambda / n * np.sum(np.asarray(W_last, np.float64) ** 2)
    return loss_pinball + Lambda * l2


if __name__ == "__main__":
    key = jax.random.PRNGKey(0)
    N, Q, hidden, Din = 8, 3, 32, 4
    quantiles = jnp.array([0.1, 0.5, 0.9], dtype=jnp.float32)

    ks = jax.random.split(key, 8)
    preds = jax.random.normal(ks[0], (N, Q), jnp.float32)
    target = jax.random.normal(ks[1], (N,), jnp.float32)
    W1 = 0.1 * jax.random.normal(ks[2], (hidden, Din), jnp.float32)
    b1 = 0.1 * jax.random.normal(ks[3], (hidden,), jnp.float32)
    W_last = 0.1 * jax.random.normal(ks[4], (Q, hidden), jnp.float32)
    W1_anc = 0.1 * jax.random.normal(ks[5], (hidden, Din), jnp.float32)
    b1_anc = 0.1 * jax.random.normal(ks[6], (hidden,), jnp.float32)
    W_last_anc = 0.1 * jax.random.normal(ks[7], (Q, hidden), jnp.float32)
    lam = dict(W1_lambda=0.5, b1_lambda=0.3, W_last_lambda=0.7, Lambda=1.0)

    # 1) All three regularization modes, tiny batch (single partial block).
    for reg in ('anc', 'reg', 'free'):
        out = pinball_bayes_loss_pallas(
            preds, target, quantiles, W1, W1_anc, b1, b1_anc, W_last, W_last_anc,
            reg=reg, **lam)
        out = jax.block_until_ready(out)
        ref = reference_loss(preds, target, quantiles, W1, W1_anc, b1, b1_anc,
                             W_last, W_last_anc, 0.5, 0.3, 0.7, 1.0, reg=reg)
        assert np.allclose(np.asarray(out), ref, rtol=1e-4, atol=1e-4), (reg, float(out), ref)

    # 2) Multi-block grid + megacore partials + clamped duplicate tail cell.
    N2 = 1100
    k2 = jax.random.split(jax.random.PRNGKey(1), 2)
    preds2 = jax.random.normal(k2[0], (N2, Q), jnp.float32)
    target2 = jax.random.normal(k2[1], (N2,), jnp.float32)
    out2 = pinball_bayes_loss_pallas(
        preds2, target2, quantiles, W1, W1_anc, b1, b1_anc, W_last, W_last_anc,
        reg='anc', block_lanes=128, **lam)
    out2 = jax.block_until_ready(out2)
    ref2 = reference_loss(preds2, target2, quantiles, W1, W1_anc, b1, b1_anc,
                          W_last, W_last_anc, 0.5, 0.3, 0.7, 1.0, reg='anc')
    assert np.allclose(np.asarray(out2), ref2, rtol=1e-4, atol=1e-4), (float(out2), ref2)

    # 3) Default (large) block with the multi-chunk inner loop + tail mask.
    N3 = 20000
    k3 = jax.random.split(jax.random.PRNGKey(2), 2)
    preds3 = jax.random.normal(k3[0], (N3, Q), jnp.float32)
    target3 = jax.random.normal(k3[1], (N3,), jnp.float32)
    out3 = pinball_bayes_loss_pallas(
        preds3, target3, quantiles, W1, W1_anc, b1, b1_anc, W_last, W_last_anc,
        reg='reg', **lam)
    out3 = jax.block_until_ready(out3)
    ref3 = reference_loss(preds3, target3, quantiles, W1, W1_anc, b1, b1_anc,
                          W_last, W_last_anc, 0.5, 0.3, 0.7, 1.0, reg='reg')
    assert np.allclose(np.asarray(out3), ref3, rtol=1e-4, atol=1e-4), (float(out3), ref3)

    print("KERNEL_OK")
</pallas_src>

<mosaic_0001>
module attributes {stable_mosaic.version = 11 : i64} {
  func.func @_pinball_partial_kernel(%arg0: i32, %arg1: i32, %arg2: memref<3x128xf32, #tpu.memory_space<vmem>>, %arg3: memref<1x128xf32, #tpu.memory_space<vmem>>, %arg4: memref<3x1xf32, #tpu.memory_space<vmem>>, %arg5: memref<1x1x1xf32, #tpu.memory_space<vmem>>, %arg6: memref<3x1xf32, #tpu.memory_space<vmem>>, %arg7: memref<1x1xf32, #tpu.memory_space<vmem>>, %arg8: memref<3x1xf32, #tpu.memory_space<vmem>>) attributes {dimension_semantics = [#tpu.dimension_semantics<parallel>, #tpu.dimension_semantics<arbitrary>], iteration_bounds = array<i64: 1, 1>, scalar_prefetch = 0 : i64, scratch_operands = 3 : i64, tpu.core_type = #tpu.core_type<tc>, window_params = [{transform_indices = @transform_0, window_bounds = array<i64: 3, 128>}, {transform_indices = @transform_1, window_bounds = array<i64: 1, 128>}, {pipeline_mode = #tpu.pipeline_mode<synchronous>, transform_indices = @transform_2, window_bounds = array<i64: 3, 1>}, {transform_indices = @transform_3, window_bounds = array<i64: 1, 1, 1>}]} {
    %c0_i32 = arith.constant 0 : i32
    %0 = arith.cmpi eq, %arg1, %c0_i32 : i32
    %1 = arith.extui %0 : i1 to i32
    %c0_i32_0 = arith.constant 0 : i32
    %2 = arith.cmpi ne, %1, %c0_i32_0 : i32
    scf.if %2 {
      %cst = arith.constant 0.000000e+00 : f32
      %14 = vector.broadcast %cst : f32 to vector<3x1xf32>
      %c0 = arith.constant 0 : index
      %c0_7 = arith.constant 0 : index
      %15 = vector.load %arg6[%c0, %c0_7] : memref<3x1xf32, #tpu.memory_space<vmem>>, vector<3x1xf32>
      tpu.vector_store %arg6[%c0, %c0_7], %14 {strides = array<i32>} : memref<3x1xf32, #tpu.memory_space<vmem>>, vector<3x1xf32>,
      %cst_8 = arith.constant 0.000000e+00 : f32
      %16 = vector.broadcast %cst_8 : f32 to vector<1x1xf32>
      %c0_9 = arith.constant 0 : index
      %c0_10 = arith.constant 0 : index
      %17 = vector.load %arg7[%c0_9, %c0_10] : memref<1x1xf32, #tpu.memory_space<vmem>>, vector<1x1xf32>
      tpu.vector_store %arg7[%c0_9, %c0_10], %16 {strides = array<i32>} : memref<1x1xf32, #tpu.memory_space<vmem>>, vector<1x1xf32>,
      %cst_11 = arith.constant 0.000000e+00 : f32
      %18 = vector.broadcast %cst_11 : f32 to vector<3x1xf32>
      %c0_12 = arith.constant 0 : index
      %c0_13 = arith.constant 0 : index
      %19 = vector.load %arg8[%c0_12, %c0_13] : memref<3x1xf32, #tpu.memory_space<vmem>>, vector<3x1xf32>
      tpu.vector_store %arg8[%c0_12, %c0_13], %18 {strides = array<i32>} : memref<3x1xf32, #tpu.memory_space<vmem>>, vector<3x1xf32>,
    } else {
    }
    %c1_i32 = arith.constant 1 : i32
    %3 = arith.muli %arg0, %c1_i32 : i32
    %4 = arith.addi %3, %arg1 : i32
    %c0_i32_1 = arith.constant 0 : i32
    %5 = arith.cmpi slt, %4, %c0_i32_1 : i32
    %6 = arith.extui %5 : i1 to i32
    %c0_i32_2 = arith.constant 0 : i32
    %7 = arith.cmpi ne, %6, %c0_i32_2 : i32
    scf.if %7 {
      %cst = arith.constant 0.000000e+00 : f32
      %14 = vector.broadcast %cst : f32 to vector<3x1xf32>
      %cst_7 = arith.constant 0.000000e+00 : f32
      %15 = vector.broadcast %cst_7 : f32 to vector<1x1xf32>
      %cst_8 = arith.constant 0.000000e+00 : f32
      %16 = vector.broadcast %cst_8 : f32 to vector<3x1xf32>
      %c0_i32_9 = arith.constant 0 : i32
      %c128_i32 = arith.constant 128 : i32
      %17 = arith.muli %c0_i32_9, %c128_i32 : i32
      %18 = tpu.assume_multiple %17, 128 : i32
      %c0 = arith.constant 0 : index
      %19 = arith.index_cast %18 : i32 to index
      %20 = vector.load %arg2[%c0, %19] : memref<3x128xf32, #tpu.memory_space<vmem>>, vector<3x128xf32>
      %c0_10 = arith.constant 0 : index
      %21 = arith.index_cast %18 : i32 to index
      %22 = vector.load %arg3[%c0_10, %21] : memref<1x128xf32, #tpu.memory_space<vmem>>, vector<1x128xf32>
      %23 = vector.broadcast %22 : vector<1x128xf32> to vector<3x128xf32>
      %24 = arith.subf %20, %23 : vector<3x128xf32>
      %cst_11 = arith.constant 0.000000e+00 : f32
      %25 = vector.broadcast %cst_11 : f32 to vector<3x128xf32>
      %26 = arith.maximumf %24, %25 : vector<3x128xf32>
      %cst_12 = arith.constant dense<0.000000e+00> : vector<3xf32>
      %27 = vector.multi_reduction <add>, %20, %cst_12 [1] : vector<3x128xf32> to vector<3xf32>
      %28 = vector.shape_cast %27 : vector<3xf32> to vector<3x1xf32>
      %29 = arith.addf %14, %28 : vector<3x1xf32>
      %cst_13 = arith.constant dense<0.000000e+00> : vector<3xf32>
      %30 = vector.multi_reduction <add>, %26, %cst_13 [1] : vector<3x128xf32> to vector<3xf32>
      %31 = vector.shape_cast %30 : vector<3xf32> to vector<3x1xf32>
      %32 = arith.addf %16, %31 : vector<3x1xf32>
      %cst_14 = arith.constant dense<0.000000e+00> : vector<1xf32>
      %33 = vector.multi_reduction <add>, %22, %cst_14 [1] : vector<1x128xf32> to vector<1xf32>
      %34 = vector.shape_cast %33 : vector<1xf32> to vector<1x1xf32>
      %35 = arith.addf %15, %34 : vector<1x1xf32>
      %c1_i32_15 = arith.constant 1 : i32
      %c0_16 = arith.constant 0 : index
      %c0_17 = arith.constant 0 : index
      %36 = vector.load %arg6[%c0_16, %c0_17] : memref<3x1xf32, #tpu.memory_space<vmem>>, vector<3x1xf32>
      %37 = arith.addf %36, %29 : vector<3x1xf32>
      %c0_18 = arith.constant 0 : index
      %c0_19 = arith.constant 0 : index
      %38 = vector.load %arg6[%c0_18, %c0_19] : memref<3x1xf32, #tpu.memory_space<vmem>>, vector<3x1xf32>
      tpu.vector_store %arg6[%c0_18, %c0_19], %37 {strides = array<i32>} : memref<3x1xf32, #tpu.memory_space<vmem>>, vector<3x1xf32>,
      %c0_20 = arith.constant 0 : index
      %c0_21 = arith.constant 0 : index
      %39 = vector.load %arg7[%c0_20, %c0_21] : memref<1x1xf32, #tpu.memory_space<vmem>>, vector<1x1xf32>
      %40 = arith.addf %39, %35 : vector<1x1xf32>
      %c0_22 = arith.constant 0 : index
      %c0_23 = arith.constant 0 : index
      %41 = vector.load %arg7[%c0_22, %c0_23] : memref<1x1xf32, #tpu.memory_space<vmem>>, vector<1x1xf32>
      tpu.vector_store %arg7[%c0_22, %c0_23], %40 {strides = array<i32>} : memref<1x1xf32, #tpu.memory_space<vmem>>, vector<1x1xf32>,
      %c0_24 = arith.constant 0 : index
      %c0_25 = arith.constant 0 : index
      %42 = vector.load %arg8[%c0_24, %c0_25] : memref<3x1xf32, #tpu.memory_space<vmem>>, vector<3x1xf32>
      %43 = arith.addf %42, %32 : vector<3x1xf32>
      %c0_26 = arith.constant 0 : index
      %c0_27 = arith.constant 0 : index
      %44 = vector.load %arg8[%c0_26, %c0_27] : memref<3x1xf32, #tpu.memory_space<vmem>>, vector<3x1xf32>
      tpu.vector_store %arg8[%c0_26, %c0_27], %43 {strides = array<i32>} : memref<3x1xf32, #tpu.memory_space<vmem>>, vector<3x1xf32>,
    } else {
    }
    %c0_i32_3 = arith.constant 0 : i32
    %8 = arith.cmpi sge, %4, %c0_i32_3 : i32
    %9 = arith.extui %8 : i1 to i32
    %c0_i32_4 = arith.constant 0 : i32
    %10 = arith.cmpi ne, %9, %c0_i32_4 : i32
    scf.if %10 {
      %cst = arith.constant 0.000000e+00 : f32
      %14 = vector.broadcast %cst : f32 to vector<3x1xf32>
      %cst_7 = arith.constant 0.000000e+00 : f32
      %15 = vector.broadcast %cst_7 : f32 to vector<1x1xf32>
      %cst_8 = arith.constant 0.000000e+00 : f32
      %16 = vector.broadcast %cst_8 : f32 to vector<3x1xf32>
      %c0_i32_9 = arith.constant 0 : i32
      %c128_i32 = arith.constant 128 : i32
      %17 = arith.muli %c0_i32_9, %c128_i32 : i32
      %18 = tpu.assume_multiple %17, 128 : i32
      %c0 = arith.constant 0 : index
      %19 = arith.index_cast %18 : i32 to index
      %20 = vector.load %arg2[%c0, %19] : memref<3x128xf32, #tpu.memory_space<vmem>>, vector<3x128xf32>
      %c0_10 = arith.constant 0 : index
      %21 = arith.index_cast %18 : i32 to index
      %22 = vector.load %arg3[%c0_10, %21] : memref<1x128xf32, #tpu.memory_space<vmem>>, vector<1x128xf32>
      %23 = tpu.iota {dimensions = array<i32: 1>} : vector<1x128xi32>
      %c128_i32_11 = arith.constant 128 : i32
      %24 = arith.muli %4, %c128_i32_11 : i32
      %25 = arith.addi %24, %18 : i32
      %26 = vector.broadcast %25 : i32 to vector<1x128xi32>
      %27 = arith.addi %26, %23 : vector<1x128xi32>
      %c8_i32 = arith.constant 8 : i32
      %28 = vector.broadcast %c8_i32 : i32 to vector<1x128xi32>
      %29 = arith.cmpi slt, %27, %28 : vector<1x128xi32>
      %cst_12 = arith.constant 0.000000e+00 : f32
      %30 = vector.shape_cast %29 : vector<1x128xi1> to vector<1x128xi1>
      %31 = vector.broadcast %30 : vector<1x128xi1> to vector<3x128xi1>
      %32 = vector.broadcast %cst_12 : f32 to vector<3x128xf32>
      %33 = arith.select %31, %20, %32 : vector<3x128xi1>, vector<3x128xf32>
      %cst_13 = arith.constant 0.000000e+00 : f32
      %34 = vector.broadcast %cst_13 : f32 to vector<1x128xf32>
      %35 = arith.select %29, %22, %34 : vector<1x128xi1>, vector<1x128xf32>
      %36 = vector.broadcast %35 : vector<1x128xf32> to vector<3x128xf32>
      %37 = arith.subf %33, %36 : vector<3x128xf32>
      %cst_14 = arith.constant 0.000000e+00 : f32
      %38 = vector.broadcast %cst_14 : f32 to vector<3x128xf32>
      %39 = arith.maximumf %37, %38 : vector<3x128xf32>
      %cst_15 = arith.constant dense<0.000000e+00> : vector<3xf32>
      %40 = vector.multi_reduction <add>, %33, %cst_15 [1] : vector<3x128xf32> to vector<3xf32>
      %41 = vector.shape_cast %40 : vector<3xf32> to vector<3x1xf32>
      %42 = arith.addf %14, %41 : vector<3x1xf32>
      %cst_16 = arith.constant dense<0.000000e+00> : vector<3xf32>
      %43 = vector.multi_reduction <add>, %39, %cst_16 [1] : vector<3x128xf32> to vector<3xf32>
      %44 = vector.shape_cast %43 : vector<3xf32> to vector<3x1xf32>
      %45 = arith.addf %16, %44 : vector<3x1xf32>
      %cst_17 = arith.constant dense<0.000000e+00> : vector<1xf32>
      %46 = vector.multi_reduction <add>, %35, %cst_17 [1] : vector<1x128xf32> to vector<1xf32>
      %47 = vector.shape_cast %46 : vector<1xf32> to vector<1x1xf32>
      %48 = arith.addf %15, %47 : vector<1x1xf32>
      %c1_i32_18 = arith.constant 1 : i32
      %c0_19 = arith.constant 0 : index
      %c0_20 = arith.constant 0 : index
      %49 = vector.load %arg6[%c0_19, %c0_20] : memref<3x1xf32, #tpu.memory_space<vmem>>, vector<3x1xf32>
      %50 = arith.addf %49, %42 : vector<3x1xf32>
      %c0_21 = arith.constant 0 : index
      %c0_22 = arith.constant 0 : index
      %51 = vector.load %arg6[%c0_21, %c0_22] : memref<3x1xf32, #tpu.memory_space<vmem>>, vector<3x1xf32>
      tpu.vector_store %arg6[%c0_21, %c0_22], %50 {strides = array<i32>} : memref<3x1xf32, #tpu.memory_space<vmem>>, vector<3x1xf32>,
      %c0_23 = arith.constant 0 : index
      %c0_24 = arith.constant 0 : index
      %52 = vector.load %arg7[%c0_23, %c0_24] : memref<1x1xf32, #tpu.memory_space<vmem>>, vector<1x1xf32>
      %53 = arith.addf %52, %48 : vector<1x1xf32>
      %c0_25 = arith.constant 0 : index
      %c0_26 = arith.constant 0 : index
      %54 = vector.load %arg7[%c0_25, %c0_26] : memref<1x1xf32, #tpu.memory_space<vmem>>, vector<1x1xf32>
      tpu.vector_store %arg7[%c0_25, %c0_26], %53 {strides = array<i32>} : memref<1x1xf32, #tpu.memory_space<vmem>>, vector<1x1xf32>,
      %c0_27 = arith.constant 0 : index
      %c0_28 = arith.constant 0 : index
      %55 = vector.load %arg8[%c0_27, %c0_28] : memref<3x1xf32, #tpu.memory_space<vmem>>, vector<3x1xf32>
      %56 = arith.addf %55, %45 : vector<3x1xf32>
      %c0_29 = arith.constant 0 : index
      %c0_30 = arith.constant 0 : index
      %57 = vector.load %arg8[%c0_29, %c0_30] : memref<3x1xf32, #tpu.memory_space<vmem>>, vector<3x1xf32>
      tpu.vector_store %arg8[%c0_29, %c0_30], %56 {strides = array<i32>} : memref<3x1xf32, #tpu.memory_space<vmem>>, vector<3x1xf32>,
    } else {
    }
    %c0_i32_5 = arith.constant 0 : i32
    %11 = arith.cmpi eq, %arg1, %c0_i32_5 : i32
    %12 = arith.extui %11 : i1 to i32
    %c0_i32_6 = arith.constant 0 : i32
    %13 = arith.cmpi ne, %12, %c0_i32_6 : i32
    scf.if %13 {
      %c0 = arith.constant 0 : index
      %c0_7 = arith.constant 0 : index
      %14 = vector.load %arg4[%c0, %c0_7] : memref<3x1xf32, #tpu.memory_space<vmem>>, vector<3x1xf32>
      %15 = vector.shape_cast %14 : vector<3x1xf32> to vector<1x3x1xf32>
      %cst = arith.constant dense<0.000000e+00> : vector<1xf32>
      %16 = vector.multi_reduction <add>, %15, %cst [1, 2] : vector<1x3x1xf32> to vector<1xf32>
      %17 = vector.shape_cast %16 : vector<1xf32> to vector<1x1x1xf32>
      %18 = vector.extract %17[0, 0, 0] : f32 from vector<1x1x1xf32>
      %c0_8 = arith.constant 0 : index
      %c0_9 = arith.constant 0 : index
      %19 = vector.load %arg7[%c0_8, %c0_9] : memref<1x1xf32, #tpu.memory_space<vmem>>, vector<1x1xf32>
      %20 = vector.broadcast %18 : f32 to vector<1x1xf32>
      %21 = arith.mulf %20, %19 : vector<1x1xf32>
      %c0_10 = arith.constant 0 : index
      %c0_11 = arith.constant 0 : index
      %22 = vector.load %arg6[%c0_10, %c0_11] : memref<3x1xf32, #tpu.memory_space<vmem>>, vector<3x1xf32>
      %23 = arith.mulf %14, %22 : vector<3x1xf32>
      %24 = vector.shape_cast %23 : vector<3x1xf32> to vector<1x3x1xf32>
      %cst_12 = arith.constant dense<0.000000e+00> : vector<1xf32>
      %25 = vector.multi_reduction <add>, %24, %cst_12 [1, 2] : vector<1x3x1xf32> to vector<1xf32>
      %26 = vector.shape_cast %25 : vector<1xf32> to vector<1x1x1xf32>
      %27 = vector.extract %26[0, 0, 0] : f32 from vector<1x1x1xf32>
      %28 = vector.broadcast %27 : f32 to vector<1x1xf32>
      %29 = arith.subf %21, %28 : vector<1x1xf32>
      %c0_13 = arith.constant 0 : index
      %c0_14 = arith.constant 0 : index
      %30 = vector.load %arg8[%c0_13, %c0_14] : memref<3x1xf32, #tpu.memory_space<vmem>>, vector<3x1xf32>
      %31 = vector.shape_cast %30 : vector<3x1xf32> to vector<1x3x1xf32>
      %cst_15 = arith.constant dense<0.000000e+00> : vector<1xf32>
      %32 = vector.multi_reduction <add>, %31, %cst_15 [1, 2] : vector<1x3x1xf32> to vector<1xf32>
      %33 = vector.shape_cast %32 : vector<1xf32> to vector<1x1x1xf32>
      %34 = vector.extract %33[0, 0, 0] : f32 from vector<1x1x1xf32>
      %35 = vector.broadcast %34 : f32 to vector<1x1xf32>
      %36 = arith.addf %29, %35 : vector<1x1xf32>
      %37 = vector.shape_cast %36 : vector<1x1xf32> to vector<1x1x1xf32>
      %c0_16 = arith.constant 0 : index
      %c0_17 = arith.constant 0 : index
      %c0_18 = arith.constant 0 : index
      %38 = vector.load %arg5[%c0_16, %c0_17, %c0_18] : memref<1x1x1xf32, #tpu.memory_space<vmem>>, vector<1x1x1xf32>
      tpu.vector_store %arg5[%c0_16, %c0_17, %c0_18], %37 {strides = array<i32>} : memref<1x1x1xf32, #tpu.memory_space<vmem>>, vector<1x1x1xf32>,
    } else {
    }
    return
  }
  func.func @transform_0(%arg0: i32, %arg1: i32) -> (i32, i32) {
    %c1_i32 = arith.constant 1 : i32
    %0 = arith.muli %arg0, %c1_i32 : i32
    %1 = arith.addi %0, %arg1 : i32
    %c0_i32 = arith.constant 0 : i32
    %2 = arith.minsi %1, %c0_i32 : i32
    %c0_i32_0 = arith.constant 0 : i32
    %c0_i32_1 = arith.constant 0 : i32
    return %c0_i32_0, %2 : i32, i32
  }
  func.func @transform_1(%arg0: i32, %arg1: i32) -> (i32, i32) {
    %c1_i32 = arith.constant 1 : i32
    %0 = arith.muli %arg0, %c1_i32 : i32
    %1 = arith.addi %0, %arg1 : i32
    %c0_i32 = arith.constant 0 : i32
    %2 = arith.minsi %1, %c0_i32 : i32
    %c0_i32_0 = arith.constant 0 : i32
    %c0_i32_1 = arith.constant 0 : i32
    return %c0_i32_0, %2 : i32, i32
  }
  func.func @transform_2(%arg0: i32, %arg1: i32) -> (i32, i32) {
    %c0_i32 = arith.constant 0 : i32
    %c0_i32_0 = arith.constant 0 : i32
    %c0_i32_1 = arith.constant 0 : i32
    return %c0_i32, %c0_i32_0 : i32, i32
  }
  func.func @transform_3(%arg0: i32, %arg1: i32) -> (i32, i32, i32) {
    %c0_i32 = arith.constant 0 : i32
    %c0_i32_0 = arith.constant 0 : i32
    %c0_i32_1 = arith.constant 0 : i32
    return %arg0, %c0_i32, %c0_i32_0 : i32, i32, i32
  }
}

</mosaic_0001>

<bundles_post_ra>
// kernel: tpu_custom_call.1
= control target key start
LH: loop header
LB: loop body
LE: loop exit
PB: predicated region body
PF: predicated region fallthrough
CT: control target
= control target key end

     0   :  { %v118_v0 = vlaneseq  ;;  %s307_s0 = inlined_call_operand.vmem [shape: f32[3,8], index: 0, kind: input, shape index: {}]   ;;  %s308_s1 = inlined_call_operand.vmem [shape: f32[1,8], index: 1, kind: input, shape index: {}]   ;;  %s309_s2 = inlined_call_operand.vmem [shape: f32[3,1], index: 2, kind: input, shape index: {}]   ;;  %s310_s3 = inlined_call_operand.hbm [shape: f32[1,1,1], index: 3, kind: output, shape index: {}]  }
   0x1   :  { %8 = vsyncpa [#allocation6], 0  ;;  %v116_v1 = vld [vmem:[%s307_s0] sm:$0x7]  ;;  %vm132_vm0 = vcmask 1042432   ;;  %vm70_vm2 = vcmask 2048  }
   0x2   :  { %v117_v2 = vld [vmem:[%s308_s1] sm:$0x1]  ;;  %v119_v3 = vand.u32 127, %v118_v0  ;;  %v263_v11 = vmov 0.0   ;;  %vm141_vm3 = vcmask 1040384   ;;  %vm72_vm4 = vcmask 0  }
   0x3   :  { %71 = vst.msk [vmem:[#allocation2] sm:$0x7] %vm70_vm2, %v263_v11  ;;  %v160_v12 = vld [vmem:[%s309_s2] sm:$0x7]  ;;  %s264_s17 = smov [#allocation5]   ;;  %s211_s21 = sshll.u32 %s310_s3, 4  ;;  %s212_s21 = int_to_ptr.hbm [resolvable:$true] %s211_s21 }
   0x4   :  { %vm124_vm1 = vcmp.lt.s32.totalorder %v119_v3, 8  ;;  %74 = vst.msk [vmem:[#allocation4] sm:$0x7] %vm70_vm2, %v263_v11  ;;  %v162_v13 = vsel %vm70_vm2, %v160_v12, 0.0  ;;  %s209_s18 = sshll.u32 %s264_s17, 4  ;;  %s210_s18 = int_to_ptr.vmem [resolvable:$true] %s209_s18 }
   0x5   :  { %v127_v4 = vsel %vm124_vm1, %v116_v1, 0.0  ;;  %v128_v5 = vsel %vm124_vm1, %v117_v2, 0.0  ;;  %163 = vadd.xlane.f32.xlu1 %v162_v13  ;;  %73 = vst.msk [vmem:[#allocation3] sm:$0x1] %vm72_vm4, %v263_v11 }
   0x6   :  { %v129_v6 = vperm.slane %v128_v5, 0  ;;  %v133_v7 = vsel %vm132_vm0, %v127_v4, 0.0  ;;  %v142_v25 = vsel %vm141_vm3, %v128_v5, 0.0 }
   0x7   :  { %134 = vadd.xlane.f32.xlu0 %v133_v7 }
   0x8   :  { %v130_v8 = vsub.f32 %v127_v4, %v129_v6 }
   0xa   :  { %v131_v9 = vmax.f32 %v130_v8, 0.0  ;;  %v146_v14 = vld [vmem:[#allocation2] sm:$0x7] }
   0xb   :  { %v154_v17 = vld [vmem:[#allocation4] sm:$0x7] }
   0xc   :  { %v137_v10 = vsel %vm132_vm0, %v131_v9, 0.0  ;;  %v150_v44 = vld [vmem:[#allocation3] sm:$0x1] }
   0xf   :  { %138 = vadd.xlane.f32.xlu0 %v137_v10 }
  0x78   :  { %v164_v26 = vpop.xlane.xlu1 %163 }
  0x79   :  { %v165_v27 = vrot.slane %v164_v26, 4 }
  0x7a   :  { %v135_v15 = vpop.xlane.xlu0 %134 }
  0x7b   :  { %v147_v16 = vadd.f32 %v146_v14, %v135_v15  ;;  %v166_v28 = vadd.f32 %v165_v27, %v164_v26 }
  0x7d   :  { %149 = vst.msk [vmem:[#allocation2] sm:$0x7] %vm70_vm2, %v147_v16  ;;  %v167_v29 = vrot.slane %v166_v28, 2 }
  0x7f   :  { %v168_v30 = vadd.f32 %v167_v29, %v166_v28 }
  0x81   :  { %v169_v31 = vrot.slane %v168_v30, 1 }
  0x82   :  { %v139_v18 = vpop.xlane.xlu0 %138 }
  0x83   :  { %v155_v19 = vadd.f32 %v154_v17, %v139_v18  ;;  %v170_v32 = vadd.f32 %v169_v31, %v168_v30 }
  0x84   :  { %v175_v20 = vld [vmem:[#allocation2] sm:$0x7] }
  0x85   :  { %v176_v21 = vmul.f32 %v175_v20, %v160_v12  ;;  %156 = vst.msk [vmem:[#allocation4] sm:$0x7] %vm70_vm2, %v155_v19 }
  0x86   :  { %229 = vpush %v170_v32 }
  0x87   :  { %v177_v22 = vsel %vm70_vm2, %v176_v21, 0.0 }
  0x88   :  { %178 = vadd.xlane.f32.xlu1 %v177_v22 }
  0x8c   :  { %v189_v23 = vld [vmem:[#allocation4] sm:$0x7] }
  0x8d   :  { %v190_v24 = vsel %vm70_vm2, %v189_v23, 0.0 }
  0x8e   :  { %191 = vadd.xlane.f32.xlu2 %v190_v24 }
  0x96   :  { %143 = vadd.xlane.f32.xlu2 %v142_v25 }
  0xb7   :  { %s230_s2 = spop %229 }
  0xb8   :  { %v173_v51 = vstv %s230_s2 }
  0xfb   :  { %v179_v33 = vpop.xlane.xlu1 %178 }
  0xfc   :  { %v180_v34 = vrot.slane %v179_v33, 4 }
  0xfe   :  { %v181_v35 = vadd.f32 %v180_v34, %v179_v33 }
 0x100   :  { %v182_v36 = vrot.slane %v181_v35, 2 }
 0x101   :  { %v192_v37 = vpop.xlane.xlu2 %191 }
 0x102   :  { %v183_v38 = vadd.f32 %v182_v36, %v181_v35  ;;  %v193_v39 = vrot.slane %v192_v37, 4 }
 0x104   :  { %v194_v40 = vadd.f32 %v193_v39, %v192_v37  ;;  %v184_v41 = vrot.slane %v183_v38, 1 }
 0x106   :  { %v195_v42 = vrot.slane %v194_v40, 2  ;;  %v185_v43 = vadd.f32 %v184_v41, %v183_v38 }
 0x108   :  { %231 = vpush %v185_v43  ;;  %v196_v45 = vadd.f32 %v195_v42, %v194_v40 }
 0x109   :  { %v144_v46 = vpop.xlane.xlu2 %143 }
 0x10a   :  { %v197_v47 = vrot.slane %v196_v45, 1  ;;  %v151_v48 = vadd.f32 %v150_v44, %v144_v46 }
 0x10c   :  { %v198_v49 = vadd.f32 %v197_v47, %v196_v45  ;;  %153 = vst.msk [vmem:[#allocation3] sm:$0x1] %vm72_vm4, %v151_v48 }
 0x10e   :  { %233 = vpush %v198_v49 }
 0x113   :  { %v172_v50 = vld [vmem:[#allocation3] sm:$0x1] }
 0x114   :  { %v174_v53 = vmul.f32 %v173_v51, %v172_v50 }
 0x139   :  { %s232_s16 = spop %231 }
 0x13a   :  { %v187_v52 = vstv %s232_s16 }
 0x13b   :  { %v188_v54 = vsub.f32 %v174_v53, %v187_v52 }
 0x13f   :  { %s234_s22 = spop %233 }
 0x140   :  { %v200_v55 = vstv %s234_s22 }
 0x141   :  { %v201_v56 = vadd.f32 %v200_v55, %v188_v54 }
 0x143   :  { %203 = vst.msk [vmem:[#allocation5] sm:$0x1] %vm72_vm4, %v201_v56 }
 0x144   :  { %214 = dma.vmem_to_hbm [thread:$0]  %s210_s18, 16, %s212_s21, [#allocation6]  }
 0x145   :  { %261 = dma.done.wait [#allocation6], 16  }
 0x146   :  { %262 = vsyncadd [#allocation6], 4294967280 }
 0x147   :  { %219 = vsyncpa [#allocation6], 1 }

</bundles_post_ra>
